<compile_context>
chip_gen: v7x
topology: tpu7x:2x2x1
jax: 0.10.0
libtpu: 0.0.40
codegen_flags: <defaults>
</compile_context>

<pallas_src>
import functools

import jax
import jax.numpy as jnp
from jax.experimental import pallas as pl
from jax.experimental.pallas import tpu as pltpu

# Model dimensions (x_dim fixed at 784 by x.view(-1, 784) in the reference).
X_DIM = 784
X_PAD = 896          # 7 * 128, lane-aligned
H_DIM1 = 128
H_DIM2 = 64
Z_DIM = 16
MZ_LO = X_DIM                  # output lanes 784:800 -> mu, 800:816 -> log_var
MZ_HI = X_DIM + 2 * Z_DIM


def _round_up(n, m):
    return ((n + m - 1) // m) * m


def vae_kernel(
    xe_ref,
    w1_ref, b1_ref,
    w2_ref, b2_ref,
    w3_ref, b3_ref,        # fused fc31 || fc32
    w4_ref, b4_ref,
    w5_ref, b5_ref,
    w6_ref, b6_ref,
    out_ref,
):
    # (TB, 896) bf16; lanes 0:784 = x, 784:800 = eps, 800:896 = zero padding.
    xe = xe_ref[...]

    # ---- encoder ----
    h = jnp.dot(xe, w1_ref[...], preferred_element_type=jnp.float32) + b1_ref[...]
    h = jnp.maximum(h, 0.0).astype(jnp.bfloat16)             # relu
    h = jnp.dot(h, w2_ref[...], preferred_element_type=jnp.float32) + b2_ref[...]
    h = jnp.maximum(h, 0.0).astype(jnp.bfloat16)             # relu

    # fused heads: one (64, 32) matmul -> [mu | log_var]
    mz = jnp.dot(h, w3_ref[...], preferred_element_type=jnp.float32) + b3_ref[...]
    lane = jax.lax.broadcasted_iota(jnp.int32, mz.shape, 1)
    # clamp only the log_var half, in place (VPU mask, no concat / relayout)
    mz = jnp.where(lane < Z_DIM, mz, jnp.clip(mz, -1e-07, 1e-07))
    mu = mz[:, :Z_DIM]
    log_var = mz[:, Z_DIM:]

    # ---- sampling (reparameterization): z = eps * exp(0.5*log_var) + mu ----
    eps = xe[:, X_DIM:X_DIM + Z_DIM].astype(jnp.float32)     # packed into x's pad lanes
    std = jnp.exp(0.5 * log_var)
    z = (eps * std + mu).astype(jnp.bfloat16)

    # ---- decoder ----
    d = jnp.dot(z, w4_ref[...], preferred_element_type=jnp.float32) + b4_ref[...]
    d = jnp.maximum(d, 0.0).astype(jnp.bfloat16)             # relu
    d = jnp.dot(d, w5_ref[...], preferred_element_type=jnp.float32) + b5_ref[...]
    d = jnp.maximum(d, 0.0).astype(jnp.bfloat16)             # relu
    logits = jnp.dot(d, w6_ref[...], preferred_element_type=jnp.float32) + b6_ref[...]

    # Single lane-dense bf16 output block; mu||log_var folded into padded lanes
    # (tiny masked VMEM store; the HBM writeback stays one dense (TB, 896) DMA).
    out_ref[...] = jax.nn.sigmoid(logits).astype(jnp.bfloat16)
    out_ref[:, MZ_LO:MZ_HI] = mz.astype(jnp.bfloat16)


def init_linear(key, in_f, out_f):
    """Deterministic init mimicking torch.nn.Linear default (uniform +/- 1/sqrt(in))."""
    kw, kb = jax.random.split(key)
    bound = 1.0 / (in_f ** 0.5)
    # weight stored pre-transposed as (in, out)
    w = jax.random.uniform(kw, (in_f, out_f), jnp.float32, -bound, bound)
    b = jax.random.uniform(kb, (1, out_f), jnp.float32, -bound, bound)
    return w, b


def make_params(key):
    keys = jax.random.split(key, 7)
    return {
        "fc1": init_linear(keys[0], X_DIM, H_DIM1),
        "fc2": init_linear(keys[1], H_DIM1, H_DIM2),
        "fc31": init_linear(keys[2], H_DIM2, Z_DIM),
        "fc32": init_linear(keys[3], H_DIM2, Z_DIM),
        "fc4": init_linear(keys[4], Z_DIM, H_DIM2),
        "fc5": init_linear(keys[5], H_DIM2, H_DIM1),
        "fc6": init_linear(keys[6], H_DIM1, X_DIM),
    }


def prep_params_for_kernel(params):
    """Pad fc1/fc6 to X_PAD, fuse fc31/fc32, cast weights to bf16 (biases f32)."""
    w1, b1 = params["fc1"]
    w2, b2 = params["fc2"]
    w31, b31 = params["fc31"]
    w32, b32 = params["fc32"]
    w4, b4 = params["fc4"]
    w5, b5 = params["fc5"]
    w6, b6 = params["fc6"]

    w1p = jnp.pad(w1, ((0, X_PAD - X_DIM), (0, 0)))            # (896, 128); pad rows zero
    w6p = jnp.pad(w6, ((0, 0), (0, X_PAD - X_DIM)))            # (128, 896)
    b6p = jnp.pad(b6, ((0, 0), (0, X_PAD - X_DIM)))            # (1, 896)
    w3 = jnp.concatenate([w31, w32], axis=1)                   # (64, 32)
    b3 = jnp.concatenate([b31, b32], axis=1)                   # (1, 32)

    bf = jnp.bfloat16
    return [
        w1p.astype(bf), b1,
        w2.astype(bf), b2,
        w3.astype(bf), b3,
        w4.astype(bf), b4,
        w5.astype(bf), b5,
        w6p.astype(bf), b6p,
    ]


def _choose_tile(batch, tb):
    """Batch tile: multiple of 16 (bf16 sublanes), and >= 2 grid steps when the
    batch allows it so the 'parallel' axis feeds both v7x TensorCores."""
    tb = max(16, min(_round_up(tb, 16), _round_up(batch, 16)))
    if batch >= 32:
        tb = min(tb, _round_up(-(-batch // 2), 16))
    return tb


@functools.partial(jax.jit, static_argnames=("tb",))
def vae_forward(x_nchw, params, eps, *, tb=1024):
    """Returns (reconstruction[bf16], mu, log_var) matching the PyTorch forward()."""
    B = x_nchw.shape[0]
    tb = _choose_tile(B, tb)
    b_pad = _round_up(B, tb)

    x2d = x_nchw.reshape(B, X_DIM)                  # == torch x.view(-1, 784)

    # One fused packing pass (under jit): [ x | eps | zeros ] in bf16, rows padded.
    # In a training pipeline, produce x/eps already packed upstream to skip this.
    xe = jnp.concatenate(
        [x2d.astype(jnp.bfloat16),
         eps.astype(jnp.bfloat16),
         jnp.zeros((B, X_PAD - X_DIM - Z_DIM), jnp.bfloat16)],
        axis=-1)
    xe = jnp.pad(xe, ((0, b_pad - B), (0, 0)))                  # (b_pad, 896) bf16

    flat_params = prep_params_for_kernel(params)

    row_map = lambda i: (i, 0)      # activation / output tiles follow the grid
    fixed_map = lambda i: (0, 0)    # weights/biases resident across grid steps

    in_specs = [pl.BlockSpec((tb, X_PAD), row_map)] + [
        pl.BlockSpec(p.shape, fixed_map) for p in flat_params
    ]

    out = pl.pallas_call(
        vae_kernel,
        out_shape=jax.ShapeDtypeStruct((b_pad, X_PAD), jnp.bfloat16),
        grid=(b_pad // tb,),
        in_specs=in_specs,
        out_specs=pl.BlockSpec((tb, X_PAD), row_map),
        compiler_params=pltpu.CompilerParams(
            dimension_semantics=("parallel",),        # shard batch over v7x's 2 TCs
            vmem_limit_bytes=32 * 1024 * 1024,        # tb<=2048 bf16 fits easily (v7x safe)
        ),
    )(xe, *flat_params)

    recon = out[:B, :X_DIM]                                       # bf16
    mu = out[:B, MZ_LO:MZ_LO + Z_DIM].astype(jnp.float32)
    log_var = out[:B, MZ_LO + Z_DIM:MZ_HI].astype(jnp.float32)
    return recon, mu, log_var


def vae_forward_ref(x_nchw, params, eps):
    """Pure-JAX f32 reference for validation (unpadded, unfused)."""
    B = x_nchw.shape[0]
    x = x_nchw.reshape(B, X_DIM).astype(jnp.float32)
    relu = lambda v: jnp.maximum(v, 0.0)
    lin = lambda v, p: v @ p[0] + p[1]
    h = relu(lin(x, params["fc1"]))
    h = relu(lin(h, params["fc2"]))
    mu = lin(h, params["fc31"])
    log_var = jnp.clip(lin(h, params["fc32"]), -1e-07, 1e-07)
    z = eps * jnp.exp(0.5 * log_var) + mu
    d = relu(lin(z, params["fc4"]))
    d = relu(lin(d, params["fc5"]))
    recon = jax.nn.sigmoid(lin(d, params["fc6"]))
    return recon, mu, log_var


if __name__ == "__main__":
    key = jax.random.PRNGKey(0)
    k_params, k_x, k_eps = jax.random.split(key, 3)

    params = make_params(k_params)
    BATCH = 32
    # MNIST-like NCHW input: (B, 1, 28, 28), values in [0, 1)
    x = jax.random.uniform(k_x, (BATCH, 1, 28, 28), jnp.float32)
    # eps for reparameterization (torch.randn_like(std)), drawn deterministically
    eps = jax.random.normal(k_eps, (BATCH, Z_DIM), jnp.float32)

    # BATCH=32 -> tile clamps to 16 rows, 2 grid steps (exercises multi-step grid
    # and both v7x TensorCores); production batches use tb=1024 tiles.
    recon, mu, log_var = vae_forward(x, params, eps, tb=1024)
    jax.block_until_ready((recon, mu, log_var))

    assert recon.shape == (BATCH, X_DIM)
    assert mu.shape == (BATCH, Z_DIM)
    assert log_var.shape == (BATCH, Z_DIM)

    # sanity check against pure-JAX f32 reference (kernel matmuls, eps, and the
    # recon/mu outputs are bf16, so tolerances are loosened accordingly)
    r_ref, mu_ref, lv_ref = vae_forward_ref(x, params, eps)
    assert jnp.allclose(recon.astype(jnp.float32), r_ref, atol=3e-2), "recon mismatch"
    assert jnp.allclose(mu, mu_ref, atol=5e-2), "mu mismatch"
    assert jnp.allclose(log_var, lv_ref, atol=1e-6), "log_var mismatch"

    print("KERNEL_OK")
</pallas_src>

<mosaic_0001>
module attributes {stable_mosaic.version = 11 : i64} {
  func.func @vae_kernel(%arg0: i32, %arg1: memref<16x896xbf16, #tpu.memory_space<vmem>>, %arg2: memref<896x128xbf16, #tpu.memory_space<vmem>>, %arg3: memref<1x128xf32, #tpu.memory_space<vmem>>, %arg4: memref<128x64xbf16, #tpu.memory_space<vmem>>, %arg5: memref<1x64xf32, #tpu.memory_space<vmem>>, %arg6: memref<64x32xbf16, #tpu.memory_space<vmem>>, %arg7: memref<1x32xf32, #tpu.memory_space<vmem>>, %arg8: memref<16x64xbf16, #tpu.memory_space<vmem>>, %arg9: memref<1x64xf32, #tpu.memory_space<vmem>>, %arg10: memref<64x128xbf16, #tpu.memory_space<vmem>>, %arg11: memref<1x128xf32, #tpu.memory_space<vmem>>, %arg12: memref<128x896xbf16, #tpu.memory_space<vmem>>, %arg13: memref<1x896xf32, #tpu.memory_space<vmem>>, %arg14: memref<16x896xbf16, #tpu.memory_space<vmem>>) attributes {dimension_semantics = [#tpu.dimension_semantics<parallel>], iteration_bounds = array<i64: 2>, scalar_prefetch = 0 : i64, scratch_operands = 0 : i64, tpu.core_type = #tpu.core_type<tc>, window_params = [{transform_indices = @transform_0, window_bounds = array<i64: 16, 896>}, {pipeline_mode = #tpu.pipeline_mode<synchronous>, transform_indices = @transform_1, window_bounds = array<i64: 896, 128>}, {pipeline_mode = #tpu.pipeline_mode<synchronous>, transform_indices = @transform_2, window_bounds = array<i64: 1, 128>}, {pipeline_mode = #tpu.pipeline_mode<synchronous>, transform_indices = @transform_3, window_bounds = array<i64: 128, 64>}, {pipeline_mode = #tpu.pipeline_mode<synchronous>, transform_indices = @transform_4, window_bounds = array<i64: 1, 64>}, {pipeline_mode = #tpu.pipeline_mode<synchronous>, transform_indices = @transform_5, window_bounds = array<i64: 64, 32>}, {pipeline_mode = #tpu.pipeline_mode<synchronous>, transform_indices = @transform_6, window_bounds = array<i64: 1, 32>}, {pipeline_mode = #tpu.pipeline_mode<synchronous>, transform_indices = @transform_7, window_bounds = array<i64: 16, 64>}, {pipeline_mode = #tpu.pipeline_mode<synchronous>, transform_indices = @transform_8, window_bounds = array<i64: 1, 64>}, {pipeline_mode = #tpu.pipeline_mode<synchronous>, transform_indices = @transform_9, window_bounds = array<i64: 64, 128>}, {pipeline_mode = #tpu.pipeline_mode<synchronous>, transform_indices = @transform_10, window_bounds = array<i64: 1, 128>}, {pipeline_mode = #tpu.pipeline_mode<synchronous>, transform_indices = @transform_11, window_bounds = array<i64: 128, 896>}, {pipeline_mode = #tpu.pipeline_mode<synchronous>, transform_indices = @transform_12, window_bounds = array<i64: 1, 896>}, {transform_indices = @transform_13, window_bounds = array<i64: 16, 896>}]} {
    %c0 = arith.constant 0 : index
    %c0_0 = arith.constant 0 : index
    %0 = vector.load %arg1[%c0, %c0_0] : memref<16x896xbf16, #tpu.memory_space<vmem>>, vector<16x896xbf16>
    %c0_1 = arith.constant 0 : index
    %c0_2 = arith.constant 0 : index
    %1 = vector.load %arg2[%c0_1, %c0_2] : memref<896x128xbf16, #tpu.memory_space<vmem>>, vector<896x128xbf16>
    %cst = arith.constant dense<0.000000e+00> : vector<16x128xf32>
    %2 = tpu.matmul %0, %1, %cst {dimension_numbers = #tpu.dot_dimension_numbers<[1], [0], [0], [1], [0, 0, 1, 1], [], []>} : vector<16x896xbf16>, vector<896x128xbf16>, vector<16x128xf32> -> vector<16x128xf32>
    %c0_3 = arith.constant 0 : index
    %c0_4 = arith.constant 0 : index
    %3 = vector.load %arg3[%c0_3, %c0_4] : memref<1x128xf32, #tpu.memory_space<vmem>>, vector<1x128xf32>
    %4 = vector.broadcast %3 : vector<1x128xf32> to vector<16x128xf32>
    %5 = arith.addf %2, %4 : vector<16x128xf32>
    %cst_5 = arith.constant 0.000000e+00 : f32
    %6 = vector.broadcast %cst_5 : f32 to vector<16x128xf32>
    %7 = arith.maximumf %5, %6 : vector<16x128xf32>
    %8 = arith.truncf %7 : vector<16x128xf32> to vector<16x128xbf16>
    %c0_6 = arith.constant 0 : index
    %c0_7 = arith.constant 0 : index
    %9 = vector.load %arg4[%c0_6, %c0_7] : memref<128x64xbf16, #tpu.memory_space<vmem>>, vector<128x64xbf16>
    %cst_8 = arith.constant dense<0.000000e+00> : vector<16x64xf32>
    %10 = tpu.matmul %8, %9, %cst_8 {dimension_numbers = #tpu.dot_dimension_numbers<[1], [0], [0], [1], [0, 0, 1, 1], [], []>} : vector<16x128xbf16>, vector<128x64xbf16>, vector<16x64xf32> -> vector<16x64xf32>
    %c0_9 = arith.constant 0 : index
    %c0_10 = arith.constant 0 : index
    %11 = vector.load %arg5[%c0_9, %c0_10] : memref<1x64xf32, #tpu.memory_space<vmem>>, vector<1x64xf32>
    %12 = vector.broadcast %11 : vector<1x64xf32> to vector<16x64xf32>
    %13 = arith.addf %10, %12 : vector<16x64xf32>
    %cst_11 = arith.constant 0.000000e+00 : f32
    %14 = vector.broadcast %cst_11 : f32 to vector<16x64xf32>
    %15 = arith.maximumf %13, %14 : vector<16x64xf32>
    %16 = arith.truncf %15 : vector<16x64xf32> to vector<16x64xbf16>
    %c0_12 = arith.constant 0 : index
    %c0_13 = arith.constant 0 : index
    %17 = vector.load %arg6[%c0_12, %c0_13] : memref<64x32xbf16, #tpu.memory_space<vmem>>, vector<64x32xbf16>
    %cst_14 = arith.constant dense<0.000000e+00> : vector<16x32xf32>
    %18 = tpu.matmul %16, %17, %cst_14 {dimension_numbers = #tpu.dot_dimension_numbers<[1], [0], [0], [1], [0, 0, 1, 1], [], []>} : vector<16x64xbf16>, vector<64x32xbf16>, vector<16x32xf32> -> vector<16x32xf32>
    %c0_15 = arith.constant 0 : index
    %c0_16 = arith.constant 0 : index
    %19 = vector.load %arg7[%c0_15, %c0_16] : memref<1x32xf32, #tpu.memory_space<vmem>>, vector<1x32xf32>
    %20 = vector.broadcast %19 : vector<1x32xf32> to vector<16x32xf32>
    %21 = arith.addf %18, %20 : vector<16x32xf32>
    %22 = tpu.iota {dimensions = array<i32: 1>} : vector<16x32xi32>
    %c16_i32 = arith.constant 16 : i32
    %23 = vector.broadcast %c16_i32 : i32 to vector<16x32xi32>
    %24 = arith.cmpi slt, %22, %23 : vector<16x32xi32>
    %cst_17 = arith.constant -1.000000e-07 : f32
    %cst_18 = arith.constant 1.000000e-07 : f32
    %25 = vector.broadcast %cst_17 : f32 to vector<16x32xf32>
    %26 = arith.maximumf %25, %21 : vector<16x32xf32>
    %27 = vector.broadcast %cst_18 : f32 to vector<16x32xf32>
    %28 = arith.minimumf %27, %26 : vector<16x32xf32>
    %29 = arith.select %24, %21, %28 : vector<16x32xi1>, vector<16x32xf32>
    %30 = vector.extract_strided_slice %29 {offsets = [0, 0], sizes = [16, 16], strides = [1, 1]} : vector<16x32xf32> to vector<16x16xf32>
    %31 = vector.extract_strided_slice %29 {offsets = [0, 16], sizes = [16, 16], strides = [1, 1]} : vector<16x32xf32> to vector<16x16xf32>
    %32 = vector.extract_strided_slice %0 {offsets = [0, 784], sizes = [16, 16], strides = [1, 1]} : vector<16x896xbf16> to vector<16x16xbf16>
    %33 = arith.extf %32 : vector<16x16xbf16> to vector<16x16xf32>
    %cst_19 = arith.constant 5.000000e-01 : f32
    %34 = vector.broadcast %cst_19 : f32 to vector<16x16xf32>
    %35 = arith.mulf %34, %31 : vector<16x16xf32>
    %36 = math.exp %35 : vector<16x16xf32>
    %37 = arith.mulf %33, %36 : vector<16x16xf32>
    %38 = arith.addf %37, %30 : vector<16x16xf32>
    %39 = arith.truncf %38 : vector<16x16xf32> to vector<16x16xbf16>
    %c0_20 = arith.constant 0 : index
    %c0_21 = arith.constant 0 : index
    %40 = vector.load %arg8[%c0_20, %c0_21] : memref<16x64xbf16, #tpu.memory_space<vmem>>, vector<16x64xbf16>
    %cst_22 = arith.constant dense<0.000000e+00> : vector<16x64xf32>
    %41 = tpu.matmul %39, %40, %cst_22 {dimension_numbers = #tpu.dot_dimension_numbers<[1], [0], [0], [1], [0, 0, 1, 1], [], []>} : vector<16x16xbf16>, vector<16x64xbf16>, vector<16x64xf32> -> vector<16x64xf32>
    %c0_23 = arith.constant 0 : index
    %c0_24 = arith.constant 0 : index
    %42 = vector.load %arg9[%c0_23, %c0_24] : memref<1x64xf32, #tpu.memory_space<vmem>>, vector<1x64xf32>
    %43 = vector.broadcast %42 : vector<1x64xf32> to vector<16x64xf32>
    %44 = arith.addf %41, %43 : vector<16x64xf32>
    %cst_25 = arith.constant 0.000000e+00 : f32
    %45 = vector.broadcast %cst_25 : f32 to vector<16x64xf32>
    %46 = arith.maximumf %44, %45 : vector<16x64xf32>
    %47 = arith.truncf %46 : vector<16x64xf32> to vector<16x64xbf16>
    %c0_26 = arith.constant 0 : index
    %c0_27 = arith.constant 0 : index
    %48 = vector.load %arg10[%c0_26, %c0_27] : memref<64x128xbf16, #tpu.memory_space<vmem>>, vector<64x128xbf16>
    %cst_28 = arith.constant dense<0.000000e+00> : vector<16x128xf32>
    %49 = tpu.matmul %47, %48, %cst_28 {dimension_numbers = #tpu.dot_dimension_numbers<[1], [0], [0], [1], [0, 0, 1, 1], [], []>} : vector<16x64xbf16>, vector<64x128xbf16>, vector<16x128xf32> -> vector<16x128xf32>
    %c0_29 = arith.constant 0 : index
    %c0_30 = arith.constant 0 : index
    %50 = vector.load %arg11[%c0_29, %c0_30] : memref<1x128xf32, #tpu.memory_space<vmem>>, vector<1x128xf32>
    %51 = vector.broadcast %50 : vector<1x128xf32> to vector<16x128xf32>
    %52 = arith.addf %49, %51 : vector<16x128xf32>
    %cst_31 = arith.constant 0.000000e+00 : f32
    %53 = vector.broadcast %cst_31 : f32 to vector<16x128xf32>
    %54 = arith.maximumf %52, %53 : vector<16x128xf32>
    %55 = arith.truncf %54 : vector<16x128xf32> to vector<16x128xbf16>
    %c0_32 = arith.constant 0 : index
    %c0_33 = arith.constant 0 : index
    %56 = vector.load %arg12[%c0_32, %c0_33] : memref<128x896xbf16, #tpu.memory_space<vmem>>, vector<128x896xbf16>
    %cst_34 = arith.constant dense<0.000000e+00> : vector<16x896xf32>
    %57 = tpu.matmul %55, %56, %cst_34 {dimension_numbers = #tpu.dot_dimension_numbers<[1], [0], [0], [1], [0, 0, 1, 1], [], []>} : vector<16x128xbf16>, vector<128x896xbf16>, vector<16x896xf32> -> vector<16x896xf32>
    %c0_35 = arith.constant 0 : index
    %c0_36 = arith.constant 0 : index
    %58 = vector.load %arg13[%c0_35, %c0_36] : memref<1x896xf32, #tpu.memory_space<vmem>>, vector<1x896xf32>
    %59 = vector.broadcast %58 : vector<1x896xf32> to vector<16x896xf32>
    %60 = arith.addf %57, %59 : vector<16x896xf32>
    %61 = arith.negf %60 : vector<16x896xf32>
    %62 = math.exp %61 : vector<16x896xf32>
    %cst_37 = arith.constant 1.000000e+00 : f32
    %63 = vector.broadcast %cst_37 : f32 to vector<16x896xf32>
    %64 = arith.addf %63, %62 : vector<16x896xf32>
    %65 = arith.divf %63, %64 : vector<16x896xf32>
    %66 = arith.truncf %65 : vector<16x896xf32> to vector<16x896xbf16>
    %c0_38 = arith.constant 0 : index
    %c0_39 = arith.constant 0 : index
    %67 = vector.load %arg14[%c0_38, %c0_39] : memref<16x896xbf16, #tpu.memory_space<vmem>>, vector<16x896xbf16>
    tpu.vector_store %arg14[%c0_38, %c0_39], %66 {strides = array<i32>} : memref<16x896xbf16, #tpu.memory_space<vmem>>, vector<16x896xbf16>,
    %68 = arith.truncf %29 : vector<16x32xf32> to vector<16x32xbf16>
    %c0_40 = arith.constant 0 : index
    %c784 = arith.constant 784 : index
    %69 = vector.load %arg14[%c0_40, %c784] : memref<16x896xbf16, #tpu.memory_space<vmem>>, vector<16x32xbf16>
    tpu.vector_store %arg14[%c0_40, %c784], %68 {strides = array<i32>} : memref<16x896xbf16, #tpu.memory_space<vmem>>, vector<16x32xbf16>,
    return
  }
  func.func @transform_0(%arg0: i32) -> (i32, i32) {
    %c0_i32 = arith.constant 0 : i32
    %c0_i32_0 = arith.constant 0 : i32
    return %arg0, %c0_i32 : i32, i32
  }
  func.func @transform_1(%arg0: i32) -> (i32, i32) {
    %c0_i32 = arith.constant 0 : i32
    %c0_i32_0 = arith.constant 0 : i32
    %c0_i32_1 = arith.constant 0 : i32
    return %c0_i32, %c0_i32_0 : i32, i32
  }
  func.func @transform_2(%arg0: i32) -> (i32, i32) {
    %c0_i32 = arith.constant 0 : i32
    %c0_i32_0 = arith.constant 0 : i32
    %c0_i32_1 = arith.constant 0 : i32
    return %c0_i32, %c0_i32_0 : i32, i32
  }
  func.func @transform_3(%arg0: i32) -> (i32, i32) {
    %c0_i32 = arith.constant 0 : i32
    %c0_i32_0 = arith.constant 0 : i32
    %c0_i32_1 = arith.constant 0 : i32
    return %c0_i32, %c0_i32_0 : i32, i32
  }
  func.func @transform_4(%arg0: i32) -> (i32, i32) {
    %c0_i32 = arith.constant 0 : i32
    %c0_i32_0 = arith.constant 0 : i32
    %c0_i32_1 = arith.constant 0 : i32
    return %c0_i32, %c0_i32_0 : i32, i32
  }
  func.func @transform_5(%arg0: i32) -> (i32, i32) {
    %c0_i32 = arith.constant 0 : i32
    %c0_i32_0 = arith.constant 0 : i32
    %c0_i32_1 = arith.constant 0 : i32
    return %c0_i32, %c0_i32_0 : i32, i32
  }
  func.func @transform_6(%arg0: i32) -> (i32, i32) {
    %c0_i32 = arith.constant 0 : i32
    %c0_i32_0 = arith.constant 0 : i32
    %c0_i32_1 = arith.constant 0 : i32
    return %c0_i32, %c0_i32_0 : i32, i32
  }
  func.func @transform_7(%arg0: i32) -> (i32, i32) {
    %c0_i32 = arith.constant 0 : i32
    %c0_i32_0 = arith.constant 0 : i32
    %c0_i32_1 = arith.constant 0 : i32
    return %c0_i32, %c0_i32_0 : i32, i32
  }
  func.func @transform_8(%arg0: i32) -> (i32, i32) {
    %c0_i32 = arith.constant 0 : i32
    %c0_i32_0 = arith.constant 0 : i32
    %c0_i32_1 = arith.constant 0 : i32
    return %c0_i32, %c0_i32_0 : i32, i32
  }
  func.func @transform_9(%arg0: i32) -> (i32, i32) {
    %c0_i32 = arith.constant 0 : i32
    %c0_i32_0 = arith.constant 0 : i32
    %c0_i32_1 = arith.constant 0 : i32
    return %c0_i32, %c0_i32_0 : i32, i32
  }
  func.func @transform_10(%arg0: i32) -> (i32, i32) {
    %c0_i32 = arith.constant 0 : i32
    %c0_i32_0 = arith.constant 0 : i32
    %c0_i32_1 = arith.constant 0 : i32
    return %c0_i32, %c0_i32_0 : i32, i32
  }
  func.func @transform_11(%arg0: i32) -> (i32, i32) {
    %c0_i32 = arith.constant 0 : i32
    %c0_i32_0 = arith.constant 0 : i32
    %c0_i32_1 = arith.constant 0 : i32
    return %c0_i32, %c0_i32_0 : i32, i32
  }
  func.func @transform_12(%arg0: i32) -> (i32, i32) {
    %c0_i32 = arith.constant 0 : i32
    %c0_i32_0 = arith.constant 0 : i32
    %c0_i32_1 = arith.constant 0 : i32
    return %c0_i32, %c0_i32_0 : i32, i32
  }
  func.func @transform_13(%arg0: i32) -> (i32, i32) {
    %c0_i32 = arith.constant 0 : i32
    %c0_i32_0 = arith.constant 0 : i32
    return %arg0, %c0_i32 : i32, i32
  }
}

</mosaic_0001>

<bundles_post_ra>
// kernel: vae_forward.1
= control target key start
LH: loop header
LB: loop body
LE: loop exit
PB: predicated region body
PF: predicated region fallthrough
CT: control target
= control target key end

     0   :  { %s2971_s25 = smov 0   ;;  %s3499_s0 = inlined_call_operand.vmem [shape: bf16[32,896], index: 0, kind: input, shape index: {}]   ;;  %s3500_s1 = inlined_call_operand.vmem [shape: bf16[896,128], index: 1, kind: input, shape index: {}]   ;;  %s3501_s2 = inlined_call_operand.vmem [shape: f32[1,128], index: 2, kind: input, shape index: {}]   ;;  %s3502_s3 = inlined_call_operand.vmem [shape: bf16[128,64], index: 3, kind: input, shape index: {}]   ;;  %s3503_s4 = inlined_call_operand.vmem [shape: f32[1,64], index: 4, kind: input, shape index: {}]   ;;  %s3504_s5 = inlined_call_operand.vmem [shape: bf16[64,32], index: 5, kind: input, shape index: {}]   ;;  %s3505_s6 = inlined_call_operand.vmem [shape: f32[1,32], index: 6, kind: input, shape index: {}]   ;;  %s3506_s7 = inlined_call_operand.vmem [shape: bf16[16,64], index: 7, kind: input, shape index: {}]   ;;  %s3507_s8 = inlined_call_operand.vmem [shape: f32[1,64], index: 8, kind: input, shape index: {}]   ;;  %s3508_s9 = inlined_call_operand.vmem [shape: bf16[64,128], index: 9, kind: input, shape index: {}]   ;;  %s3509_s10 = inlined_call_operand.vmem [shape: f32[1,128], index: 10, kind: input, shape index: {}]   ;;  %s3510_s11 = inlined_call_operand.vmem [shape: bf16[128,896], index: 11, kind: input, shape index: {}]   ;;  %s3511_s12 = inlined_call_operand.vmem [shape: f32[1,896], index: 12, kind: input, shape index: {}]   ;;  %s3512_s13 = inlined_call_operand.vmem [shape: bf16[32,896], index: 13, kind: output, shape index: {}]  }
   0x1 LB: > { %s2265_s26 = sadd.s32 4294967295, %s2894_s25   ;;  %p2269_p0 = scmp.ge.s32.totalorder %s2894_s25, 1  ;;  %s2894_s25 = sphi %s2971_s25, %s23_s25  }
   0x2   : > { %p389_p1 = scmp.lt.s32.totalorder %s2894_s25, 3 }
   0x4   : > { %p390_p2 = pnand %p2269_p0, %p389_p1 }
   0x5   : > { %v2665_v0 = vld [vmem:[%s3500_s1 + $0x40] sm:$0xff] (!%p390_p2)   ;;  %v2669_v4 = vld [vmem:[%s3500_s1 + $0x48] sm:$0xff] (!%p390_p2)   ;;  %v2673_v8 = vld [vmem:[%s3500_s1 + $0x50] sm:$0xff] (!%p390_p2)   ;;  %s2270_s23 = sshll.u32 (!%p390_p2), %s2265_s26, 1  ;;  %v2896_v38 = vmov (!%p390_p2), 0.0   ;;  %vm2897_vm0 = vmmov (!%p390_p2), 0  }
   0x6   : > { %393 = sbr.rel (%p390_p2) target bundleno = 1690 (0x69a), region = 72  ;;  %v2666_v1 = vld [vmem:[%s3500_s1] sm:$0xff] (!%p390_p2)   ;;  %2456 = vmatprep.subr.bf16.mxu0 (!%p390_p2), %v2665_v0  ;;  %v2670_v5 = vld [vmem:[%s3500_s1 + $0x8] sm:$0xff] (!%p390_p2)   ;;  %v2674_v9 = vld [vmem:[%s3500_s1 + $0x10] sm:$0xff] (!%p390_p2)   ;;  %p436_p3 = scmp.lt.s32.totalorder (!%p390_p2), %s2270_s23, 3  ;;  %vm1270_vm1 = vcmask (!%p390_p2), 523264  }
   0x7   : > { %v2667_v2 = vld [vmem:[%s3500_s1 + $0xc0] sm:$0xff] (!%p390_p2)   ;;  %2457 = vmatpush3.bf16.msra.mxu0 (!%p390_p2), %v2666_v1  ;;  %v2671_v6 = vld [vmem:[%s3500_s1 + $0xc8] sm:$0xff] (!%p390_p2)   ;;  %v2675_v10 = vld [vmem:[%s3500_s1 + $0xd0] sm:$0xff] (!%p390_p2)   ;;  %s2898_s18 = smov (!%p390_p2), 16   ;;  %s2899_s19 = smov (!%p390_p2), 112   ;;  %vm1363_vm3 = vcmask (!%p390_p2), 130048  }
   0x8   : > { %v2668_v3 = vld [vmem:[%s3500_s1 + $0x80] sm:$0xff] (!%p390_p2)   ;;  %2478 = vmatprep.subr.bf16.mxu1 (!%p390_p2), %v2667_v2  ;;  %2458 = vmatprep.subr.bf16.mxu0 (!%p390_p2), %v2669_v4  ;;  %v2672_v7 = vld [vmem:[%s3500_s1 + $0x88] sm:$0xff] (!%p390_p2)   ;;  %v2676_v11 = vld [vmem:[%s3500_s1 + $0x90] sm:$0xff] (!%p390_p2)   ;;  %vm2204_vm4 = vcmask (!%p390_p2), 388224  }
   0x9   : > { %2479 = vmatpush3.bf16.msra.mxu1 (!%p390_p2), %v2668_v3  ;;  %v2677_v12 = vld [vmem:[%s3500_s1 + $0x58] sm:$0xff] (!%p390_p2)   ;;  %v2681_v16 = vld [vmem:[%s3500_s1 + $0x60] sm:$0xff] (!%p390_p2)   ;;  %v2685_v20 = vld [vmem:[%s3500_s1 + $0x68] sm:$0xff] (!%p390_p2)  }
   0xa   : > { %2480 = vmatprep.subr.bf16.mxu1 (!%p390_p2), %v2671_v6  ;;  %v2678_v13 = vld [vmem:[%s3500_s1 + $0x18] sm:$0xff] (!%p390_p2)   ;;  %v2682_v17 = vld [vmem:[%s3500_s1 + $0x20] sm:$0xff] (!%p390_p2)   ;;  %v2686_v21 = vld [vmem:[%s3500_s1 + $0x28] sm:$0xff] (!%p390_p2)  }
   0xb   : > { %2459 = vmatpush3.bf16.msra.mxu0 (!%p390_p2), %v2670_v5  ;;  %v2679_v14 = vld [vmem:[%s3500_s1 + $0xd8] sm:$0xff] (!%p390_p2)   ;;  %v2683_v18 = vld [vmem:[%s3500_s1 + $0xe0] sm:$0xff] (!%p390_p2)   ;;  %v2687_v22 = vld [vmem:[%s3500_s1 + $0xe8] sm:$0xff] (!%p390_p2)  }
   0xc   : > { %2460 = vmatprep.subr.bf16.mxu0 (!%p390_p2), %v2673_v8  ;;  %v2680_v15 = vld [vmem:[%s3500_s1 + $0x98] sm:$0xff] (!%p390_p2)   ;;  %v2684_v19 = vld [vmem:[%s3500_s1 + $0xa0] sm:$0xff] (!%p390_p2)   ;;  %v2688_v23 = vld [vmem:[%s3500_s1 + $0xa8] sm:$0xff] (!%p390_p2)  }
   0xd   : > { %2481 = vmatpush3.bf16.msra.mxu1 %v2672_v7  ;;  %s3514_s23 = smov (!%p436_p3, %s2270_s23), 3  ;;  %v2689_v24 = vld [vmem:[%s3500_s1 + $0x70] sm:$0xff]   ;;  %v2693_v28 = vld [vmem:[%s3500_s1 + $0x78] sm:$0xff]   ;;  %v2700_v34 = vld [vmem:[%s3500_s1 + $0x140] sm:$0xff]  }
   0xe   : > { %2482 = vmatprep.subr.bf16.mxu1 %v2675_v10  ;;  %s2651_s16 = smul.u32 28, %s3514_s23  ;;  %v2690_v25 = vld [vmem:[%s3500_s1 + $0x30] sm:$0xff]   ;;  %v2694_v29 = vld [vmem:[%s3500_s1 + $0x38] sm:$0xff]   ;;  %v2704_v37 = vld [vmem:[%s3500_s1 + $0x100] sm:$0xff]  }
   0xf   : > { %2461 = vmatpush3.bf16.msra.mxu0 %v2674_v9  ;;  %v2691_v26 = vld [vmem:[%s3500_s1 + $0xf0] sm:$0xff]   ;;  %v2695_v30 = vld [vmem:[%s3500_s1 + $0xf8] sm:$0xff]   ;;  %v2705_v39 = vld [vmem:[%s3500_s1 + $0x180] sm:$0xff]  }
  0x10   : > { %2462 = vmatprep.subr.bf16.mxu0 %v2677_v12  ;;  %v2692_v27 = vld [vmem:[%s3500_s1 + $0xb0] sm:$0xff]   ;;  %s3076_s29 = scalar_lea.vmem %s3499_s0, %s2651_s16  ;;  %v2699_v33 = vld [vmem:[%s3500_s1 + $0xb8] sm:$0xff]   ;;  %v2706_v40 = vld [vmem:[%s3500_s1 + $0x148] sm:$0xff]   ;;  %s3483_s22 = scalar_lea.vmem %s3512_s13, %s2651_s16 }
  0x11   : > { %2483 = vmatpush3.bf16.msra.mxu1 %v2676_v11  ;;  %v2696_v31 = vld [vmem:[%s3076_s29] ss:$28 sps:$4 sm:$0xff]   ;;  %v2701_v35 = vld [vmem:[%s3076_s29 + $0x8] ss:$28 sps:$4 sm:$0xff]   ;;  %v2709_v43 = vld [vmem:[%s3500_s1 + $0x150] sm:$0xff]  }
  0x12   : > { %2484 = vmatprep.subr.bf16.mxu1 %v2679_v14  ;;  %v2698_v32 = vld [vmem:[%s3076_s29 + $0x4] ss:$28 sps:$4 sm:$0xff]   ;;  %v2703_v36 = vld [vmem:[%s3076_s29 + $0xc] ss:$28 sps:$4 sm:$0xff]   ;;  %v2710_v44 = vld [vmem:[%s3500_s1 + $0x110] sm:$0xff]  }
  0x13   : > { %2463 = vmatpush3.bf16.msra.mxu0 %v2678_v13  ;;  %981 = vmatprep.mubr.bf16.mxu0 %v2698_v32  ;;  %v2707_v41 = vld [vmem:[%s3500_s1 + $0x108] sm:$0xff]   ;;  %v2711_v45 = vld [vmem:[%s3500_s1 + $0x190] sm:$0xff]   ;;  %v2712_v46 = vld [vmem:[%s3500_s1 + $0x158] sm:$0xff]  }
  0x14   : > { %2464 = vmatprep.subr.bf16.mxu0 %v2681_v16  ;;  %1022 = vmatprep.mubr.bf16.mxu1 %v2703_v36  ;;  %v2708_v42 = vld [vmem:[%s3500_s1 + $0x188] sm:$0xff]   ;;  %v2713_v47 = vld [vmem:[%s3500_s1 + $0x118] sm:$0xff]   ;;  %v2715_v49 = vld [vmem:[%s3500_s1 + $0x160] sm:$0xff]  }
  0x15   : > { %2485 = vmatpush3.bf16.msra.mxu1 %v2680_v15  ;;  %v2714_v48 = vld [vmem:[%s3500_s1 + $0x198] sm:$0xff]   ;;  %v2716_v50 = vld [vmem:[%s3500_s1 + $0x120] sm:$0xff]   ;;  %v2718_v52 = vld [vmem:[%s3500_s1 + $0x168] sm:$0xff]  }
  0x16   : > { %2486 = vmatprep.subr.bf16.mxu1 %v2683_v18  ;;  %v2717_v51 = vld [vmem:[%s3500_s1 + $0x1a0] sm:$0xff]   ;;  %v2719_v53 = vld [vmem:[%s3500_s1 + $0x128] sm:$0xff]   ;;  %v2721_v55 = vld [vmem:[%s3500_s1 + $0x170] sm:$0xff]  }
  0x17   : > { %2465 = vmatpush3.bf16.msra.mxu0 %v2682_v17  ;;  %v2720_v54 = vld [vmem:[%s3500_s1 + $0x1a8] sm:$0xff]   ;;  %v2722_v56 = vld [vmem:[%s3500_s1 + $0x130] sm:$0xff]   ;;  %v2724_v59 = vld [vmem:[%s3500_s1 + $0x178] sm:$0xff]  }
  0x18   : > { %2466 = vmatprep.subr.bf16.mxu0 %v2685_v20  ;;  %v2723_v57 = vld [vmem:[%s3500_s1 + $0x1b0] sm:$0xff]   ;;  %v2725_v60 = vld [vmem:[%s3500_s1 + $0x138] sm:$0xff]   ;;  %v2731_v2 = vld [vmem:[%s3502_s3] sm:$0xff]  }
  0x19   : > { %2487 = vmatpush3.bf16.msra.mxu1 %v2684_v19  ;;  %v2728_v58 = vld [vmem:[%s3076_s29 + $0x14] ss:$28 sps:$4 sm:$0xff]   ;;  %v2729_v61 = vld [vmem:[%s3500_s1 + $0x1b8] sm:$0xff]   ;;  %v2732_v3 = vld [vmem:[%s3502_s3 + $0x8] sm:$0xff]  }
  0x1a   : > { %2488 = vmatprep.subr.bf16.mxu1 %v2687_v22  ;;  %v3174_v62 = vld [vmem:[%s3076_s29 + $0x18] sm:$0xf]  ;;  %v3177_v63 = vld [vmem:[%s3076_s29 + $0x34] sm:$0xf]  ;;  %v2726_v0 = vld [vmem:[%s3076_s29 + $0x10] ss:$28 sps:$4 sm:$0xff]  }
  0x1b   : > { %2467 = vmatpush3.bf16.msra.mxu0 %v2686_v21  ;;  %v2281_v1 = vcombine.low %v3174_v62, %v3177_v63  ;;  %v2733_v4 = vld [vmem:[%s3502_s3 + $0x10] sm:$0xff]   ;;  %v2734_v5 = vld [vmem:[%s3502_s3 + $0x18] sm:$0xff]   ;;  %v2735_v6 = vld [vmem:[%s3502_s3 + $0x20] sm:$0xff]  }
  0x1c   : > { %2468 = vmatprep.subr.bf16.mxu0 %v2689_v24  ;;  %v2736_v7 = vld [vmem:[%s3502_s3 + $0x28] sm:$0xff]   ;;  %v2737_v8 = vld [vmem:[%s3502_s3 + $0x30] sm:$0xff]   ;;  %v2738_v9 = vld [vmem:[%s3502_s3 + $0x38] sm:$0xff]  }
  0x1d   : > { %2489 = vmatpush3.bf16.msra.mxu1 %v2688_v23  ;;  %v2739_v10 = vld [vmem:[%s3504_s5] sm:$0xff]   ;;  %v2740_v11 = vld [vmem:[%s3504_s5 + $0x8] sm:$0xff]  }
  0x1e   : > { %2490 = vmatprep.subr.bf16.mxu1 %v2691_v26  ;;  %v2274_v13 = vld [vmem:[%s3501_s2] ss:$0 sm:$0xff] }
  0x1f   : > { %2469 = vmatpush3.bf16.msra.mxu0 %v2690_v25 }
  0x20   : > { %2470 = vmatprep.subr.bf16.mxu0 %v2693_v28 }
  0x21   : > { %2491 = vmatpush3.bf16.msra.mxu1 %v2692_v27 }
  0x22   : > { %2492 = vmatprep.subr.bf16.mxu1 %v2695_v30 }
  0x23   : > { %2471 = vmatpush3.bf16.msra.mxu0 %v2694_v29 }
  0x24   : > { %2500 = vmatprep.subr.bf16.mxu0 %v2700_v34 }
  0x25   : > { %2493 = vmatpush3.bf16.msra.mxu1 %v2699_v33 }
  0x26   : > { %982 = vmatmul.mubr.bf16.vlgmr.msra.gmra.mrb[0].mxu0 %v2696_v31  ;;  %2561 = vmatprep.subr.bf16.mxu1 %v2896_v38 }
  0x27   : > { %2501 = vmatpush3.bf16.msra.mxu0 %v2704_v37  ;;  %1063 = vmatprep.mubr.bf16.mxu0 %v2728_v58 }
  0x28   : > { %1023 = vmatmul.mubr.bf16.vlgmr.msra.gmra.mrb[0].mxu1 %v2701_v35  ;;  %2502 = vmatprep.subr.bf16.mxu0 %v2706_v40 }
  0x29   : > { %2562 = vmatpush3.bf16.msra.mxu1 %v2705_v39  ;;  %2577 = vmatprep.mubr.msk.bf16.mxu1 %vm2897_vm0, %v2896_v38 }
  0x2a   : > { %2563 = vmatprep.subr.bf16.mxu1 %v2896_v38 }
  0x2b   : > { %2503 = vmatpush3.bf16.msra.mxu0 %v2707_v41 }
  0x2c   : > { %2504 = vmatprep.subr.bf16.mxu0 %v2709_v43 }
  0x2d   : > { %2564 = vmatpush3.bf16.msra.mxu1 %v2708_v42 }
  0x2e   : > { %2565 = vmatprep.subr.bf16.mxu1 %v2896_v38 }
  0x2f   : > { %2505 = vmatpush3.bf16.msra.mxu0 %v2710_v44 }
  0x30   : > { %2506 = vmatprep.subr.bf16.mxu0 %v2712_v46 }
  0x31   : > { %2566 = vmatpush3.bf16.msra.mxu1 %v2711_v45 }
  0x32   : > { %2567 = vmatprep.subr.bf16.mxu1 %v2896_v38 }
  0x33   : > { %2507 = vmatpush3.bf16.msra.mxu0 %v2713_v47  ;;  %v2741_v47 = vld [vmem:[%s3504_s5 + $0x10] sm:$0xff]  }
  0x34   : > { %2508 = vmatprep.subr.bf16.mxu0 %v2715_v49  ;;  %v2338_v49 = vld [vmem:[%s3503_s4] ss:$0 sm:$0xff] }
  0x35   : > { %2568 = vmatpush3.bf16.msra.mxu1 %v2714_v48  ;;  %v2742_v48 = vld [vmem:[%s3504_s5 + $0x18] sm:$0xff]  }
  0x36   : > { %2569 = vmatprep.subr.bf16.mxu1 %v2896_v38 }
  0x37   : > { %2509 = vmatpush3.bf16.msra.mxu0 %v2716_v50 }
  0x38   : > { %2510 = vmatprep.subr.bf16.mxu0 %v2718_v52 }
  0x39   : > { %2570 = vmatpush3.bf16.msra.mxu1 %v2717_v51 }
  0x3a   : > { %2571 = vmatprep.subr.bf16.mxu1 %v2896_v38 }
  0x3b   : > { %2511 = vmatpush3.bf16.msra.mxu0 %v2719_v53 }
  0x3c   : > { %2512 = vmatprep.subr.bf16.mxu0 %v2721_v55 }
  0x3d   : > { %2572 = vmatpush3.bf16.msra.mxu1 %v2720_v54 }
  0x3e   : > { %2573 = vmatprep.subr.bf16.mxu1 %v2896_v38 }
  0x3f   : > { %2513 = vmatpush3.bf16.msra.mxu0 %v2722_v56 }
  0x40   : > { %2514 = vmatprep.subr.bf16.mxu0 %v2724_v59  ;;  %v1315_v59 = vlaneseq }
  0x41   : > { %2574 = vmatpush3.bf16.msra.mxu1 %v2723_v57 }
  0x42   : > { %2575 = vmatprep.subr.bf16.mxu1 %v2896_v38 }
  0x43   : > { %2515 = vmatpush3.bf16.msra.mxu0 %v2725_v60  ;;  %v2347_v60 = vld [vmem:[%s3505_s6] ss:$0 sm:$0xff] }
  0x44   : > { %2581 = vmatprep.subr.bf16.mxu0 %v2896_v38 }
  0x45   : > { %2576 = vmatpush3.bf16.msra.mxu1 %v2729_v61  ;;  %v1316_v61 = vand.u32 127, %v1315_v59 }
  0x46   : > { %2601 = vmatprep.subr.bf16.mxu1 %v2896_v38  ;;  %1064 = vmatmul.mubr.bf16.vlgmr.msra.gmra.mrb[4].mxu0 %v2726_v0 }
  0x47   : > { %2597 = vmatprep.mubr.msk.bf16.mxu0 %vm2897_vm0, %v2896_v38  ;;  %2582 = vmatpush3.bf16.msra.mxu0 %v2731_v2  ;;  %vm1317_vm2 = vcmp.lt.s32.totalorder %v1316_v61, 16  ;;  %v2771_v61 = vld [vmem:[%s3510_s11 + $0xb4] ss:$28 sps:$4 sm:$0xff]  }
  0x48   : > { %2578 = vmatmul.mubr.bf16.vlgmr.msra.gmra.mrb[4].mxu1 %v2281_v1  ;;  %2583 = vmatprep.subr.bf16.mxu0 %v2896_v38 }
  0x49   : > { %2609 = vmatprep.mubr.msk.bf16.mxu1 %vm2897_vm0, %v2896_v38  ;;  %2602 = vmatpush3.bf16.msra.mxu1 %v2739_v10 }
  0x4a   : > { %2603 = vmatprep.subr.bf16.mxu1 %v2896_v38 }
  0x4b   : > { %2584 = vmatpush3.bf16.msra.mxu0 %v2732_v3 }
  0x4c   : > { %2585 = vmatprep.subr.bf16.mxu0 %v2896_v38 }
  0x4d   : > { %2604 = vmatpush3.bf16.msra.mxu1 %v2740_v11 }
  0x4e   : > { %2605 = vmatprep.subr.bf16.mxu1 %v2896_v38 }
  0x4f   : > { %2586 = vmatpush3.bf16.msra.mxu0 %v2733_v4 }
  0x50   : > { %2587 = vmatprep.subr.bf16.mxu0 %v2896_v38 }
  0x51   : > { %2606 = vmatpush3.bf16.msra.mxu1 %v2741_v47 }
  0x52   : > { %2607 = vmatprep.subr.bf16.mxu1 %v2896_v38 }
  0x53   : > { %2588 = vmatpush3.bf16.msra.mxu0 %v2734_v5 }
  0x54   : > { %2589 = vmatprep.subr.bf16.mxu0 %v2896_v38 }
  0x55   : > { %2608 = vmatpush3.bf16.msra.mxu1 %v2742_v48 }
  0x56   : > { %2613 = vmatprep.subr.bf16.mxu1 %v2896_v38 }
  0x57   : > { %2590 = vmatpush3.bf16.msra.mxu0 %v2735_v6 }
  0x58   : > { %2591 = vmatprep.subr.bf16.mxu0 %v2896_v38 }
  0x5b   : > { %2592 = vmatpush3.bf16.msra.mxu0 %v2736_v7 }
  0x5c   : > { %2593 = vmatprep.subr.bf16.mxu0 %v2896_v38 }
  0x5f   : > { %2594 = vmatpush3.bf16.msra.mxu0 %v2737_v8 }
  0x60   : > { %2595 = vmatprep.subr.bf16.mxu0 %v2896_v38 }
  0x63   : > { %2596 = vmatpush3.bf16.msra.mxu0 %v2738_v9  ;;  %v2743_v9 = vld [vmem:[%s3506_s7] sm:$0xff]  }
  0xf9   : > { %v2472_v12 = vpop.f32.mrb[0].mxu0 }
  0xfa   : > { %v2473_v14 = vpop.f32.mrb[1].mxu0 }
  0xfb   : > { %v2474_v15 = vadd.f32 %v2473_v14, %v2472_v12  ;;  %v2475_v16 = vpop.f32.mrb[2].mxu0  ;;  %v2494_v17 = vpop.f32.mrb[0].mxu1 }
  0xfc   : > { %v2476_v18 = vpop.f32.mrb[3].mxu0  ;;  %v2495_v21 = vpop.f32.mrb[1].mxu1 }
  0xfd   : > { %v984_v19 = vadd.f32 %v2474_v15, %v2274_v13  ;;  %v2477_v20 = vadd.f32 %v2476_v18, %v2475_v16  ;;  %v2496_v22 = vadd.f32 %v2495_v21, %v2494_v17  ;;  %v2497_v23 = vpop.f32.mrb[2].mxu1  ;;  %v1324_v17 = vunpack.c.l.bf16 %v3174_v62 }
  0xfe   : > { %v2498_v25 = vpop.f32.mrb[3].mxu1  ;;  %v1325_v18 = vunpack.c.l.bf16 %v3177_v63  ;;  %v2745_v63 = vld [vmem:[%s3508_s9 + $0x8] sm:$0xff]  }
  0xff   : > { %v987_v24 = vadd.f32 %v2477_v20, %v2274_v13  ;;  %v1025_v26 = vadd.f32 %v2496_v22, %v984_v19  ;;  %v2499_v27 = vadd.f32 %v2498_v25, %v2497_v23 }
 0x101   : > { %v1028_v28 = vadd.f32 %v2499_v27, %v987_v24 }
 0x119   : > { %v2516_v29 = vpop.f32.mrb[4].mxu0 }
 0x11a   : > { %v2517_v30 = vpop.f32.mrb[5].mxu0 }
 0x11b   : > { %v1106_v31 = vpop.f32.mrb[4].mxu1  ;;  %v2518_v32 = vadd.f32 %v2517_v30, %v2516_v29  ;;  %v2519_v33 = vpop.f32.mrb[6].mxu0  ;;  %v2746_v29 = vld [vmem:[%s3508_s9 + $0x10] sm:$0xff]   ;;  %v2747_v30 = vld [vmem:[%s3508_s9 + $0x18] sm:$0xff]  }
 0x11c   : > { %v2579_v34 = vpop.f32.mrb[5].mxu1  ;;  %v2520_v35 = vpop.f32.mrb[7].mxu0 }
 0x11d   : > { %v1109_v36 = vpop.f32.mrb[6].mxu1  ;;  %v1066_v37 = vadd.f32 %v2518_v32, %v1025_v26  ;;  %v2521_v39 = vadd.f32 %v2520_v35, %v2519_v33  ;;  %v2750_v32 = vld [vmem:[%s3510_s11 + $0x4] ss:$28 sps:$4 sm:$0xff]   ;;  %v2753_v33 = vld [vmem:[%s3510_s11 + $0xc] ss:$28 sps:$4 sm:$0xff]  }
 0x11e   : > { %v2580_v40 = vpop.f32.mrb[7].mxu1  ;;  %v2756_v34 = vld [vmem:[%s3510_s11 + $0x3c] ss:$28 sps:$4 sm:$0xff]   ;;  %1886 = vmatprep.subr.bf16.mxu0 %v2750_v32 }
 0x11f   : > { %v1107_v41 = vadd.f32 %v1106_v31, %v1066_v37  ;;  %v1069_v42 = vadd.f32 %v2521_v39, %v1028_v28  ;;  %v2744_v28 = vld [vmem:[%s3508_s9] sm:$0xff]   ;;  %v2754_v35 = vld [vmem:[%s3510_s11 + $0x38] ss:$28 sps:$4 sm:$0xff]   ;;  %v2760_v37 = vld [vmem:[%s3510_s11 + $0x70] ss:$28 sps:$4 sm:$0xff]  }
 0x120   : > { %v2748_v31 = vld [vmem:[%s3510_s11] ss:$28 sps:$4 sm:$0xff]   ;;  %v2768_v39 = vld [vmem:[%s3510_s11 + $0xac] ss:$28 sps:$4 sm:$0xff]   ;;  %v2808_v32 = vld [vmem:[%s3510_s11 + $0xb8] ss:$28 sps:$4 sm:$0xff]  }
 0x121   : > { %v1110_v43 = vadd.f32 %v1109_v36, %v1069_v42  ;;  %v1113_v44 = vmax.f32 %v1107_v41, 0.0  ;;  %v2762_v36 = vld [vmem:[%s3510_s11 + $0x74] ss:$28 sps:$4 sm:$0xff]   ;;  %v2766_v40 = vld [vmem:[%s3510_s11 + $0xa8] ss:$28 sps:$4 sm:$0xff]  }
 0x122   : > { %v2774_v41 = vld [vmem:[%s3510_s11 + $0xe4] ss:$28 sps:$4 sm:$0xff]  }
 0x123   : > { %v1114_v45 = vmax.f32 %v1110_v43, 0.0  ;;  %v2772_v42 = vld [vmem:[%s3510_s11 + $0xe0] ss:$28 sps:$4 sm:$0xff]  }
 0x124   : > { %v2780_v43 = vld [vmem:[%s3510_s11 + $0x11c] ss:$28 sps:$4 sm:$0xff]  }
 0x125   : > { %v1115_v46 = vpack.c.bf16 %v1114_v45, %v1113_v44  ;;  %v2778_v44 = vld [vmem:[%s3510_s11 + $0x118] ss:$28 sps:$4 sm:$0xff]   ;;  %v2355_v45 = vld [vmem:[%s3507_s8] ss:$0 sm:$0xff] }
 0x127   : > { %2598 = vmatmul.mubr.bf16.vlgmr.msra.gmra.mrb[8].mxu0 %v1115_v46 }
 0x128   : > { %1887 = vmatpush1.bf16.msra.mxu0 %v2748_v31  ;;  %v2810_v31 = vld [vmem:[%s3510_s11 + $0xbc] ss:$28 sps:$4 sm:$0xff]  }
 0x129   : > { %1888 = vmatprep.subr.bf16.mxu0 %v2756_v34  ;;  %v2814_v34 = vld [vmem:[%s3510_s11 + $0xf4] ss:$28 sps:$4 sm:$0xff]  }
 0x12c   : > { %1889 = vmatpush1.bf16.msra.mxu0 %v2754_v35  ;;  %v2812_v35 = vld [vmem:[%s3510_s11 + $0xf0] ss:$28 sps:$4 sm:$0xff]  }
 0x12d   : > { %1890 = vmatprep.subr.bf16.mxu0 %v2762_v36  ;;  %v2815_v36 = vld [vmem:[%s3510_s11 + $0xf8] ss:$28 sps:$4 sm:$0xff]  }
 0x130   : > { %1891 = vmatpush1.bf16.msra.mxu0 %v2760_v37  ;;  %v2818_v37 = vld [vmem:[%s3510_s11 + $0x12c] ss:$28 sps:$4 sm:$0xff]  }
 0x131   : > { %1892 = vmatprep.subr.bf16.mxu0 %v2768_v39  ;;  %v2816_v39 = vld [vmem:[%s3510_s11 + $0x128] ss:$28 sps:$4 sm:$0xff]  }
 0x134   : > { %1893 = vmatpush1.bf16.msra.mxu0 %v2766_v40  ;;  %v2819_v40 = vld [vmem:[%s3510_s11 + $0x130] ss:$28 sps:$4 sm:$0xff]  }
 0x135   : > { %1894 = vmatprep.subr.bf16.mxu0 %v2774_v41  ;;  %v2822_v41 = vld [vmem:[%s3510_s11 + $0x164] ss:$28 sps:$4 sm:$0xff]  }
 0x138   : > { %1895 = vmatpush1.bf16.msra.mxu0 %v2772_v42  ;;  %v2820_v42 = vld [vmem:[%s3510_s11 + $0x160] ss:$28 sps:$4 sm:$0xff]  }
 0x139   : > { %1896 = vmatprep.subr.bf16.mxu0 %v2780_v43  ;;  %v2823_v43 = vld [vmem:[%s3510_s11 + $0x168] ss:$28 sps:$4 sm:$0xff]  }
 0x13c   : > { %1897 = vmatpush1.bf16.msra.mxu0 %v2778_v44  ;;  %v2826_v44 = vld [vmem:[%s3510_s11 + $0x19c] ss:$28 sps:$4 sm:$0xff]  }
 0x1fa   : > { %v1221_v50 = vpop.f32.mrb[8].mxu0 }
 0x1fb   : > { %v1222_v51 = vadd.f32 %v2338_v49, %v1221_v50  ;;  %v2599_v52 = vpop.f32.mrb[9].mxu0 }
 0x1fc   : > { %v1224_v53 = vpop.f32.mrb[10].mxu0 }
 0x1fd   : > { %v1225_v54 = vadd.f32 %v2338_v49, %v1224_v53  ;;  %v2600_v55 = vpop.f32.mrb[11].mxu0  ;;  %v1228_v56 = vmax.f32 %v1222_v51, 0.0 }
 0x1ff   : > { %v1229_v57 = vmax.f32 %v1225_v54, 0.0  ;;  %v2751_v54 = vld [vmem:[%s3510_s11 + $0x8] ss:$28 sps:$4 sm:$0xff]  }
 0x201   : > { %v1230_v58 = vpack.c.bf16 %v1229_v57, %v1228_v56  ;;  %v2759_v56 = vld [vmem:[%s3510_s11 + $0x44] ss:$28 sps:$4 sm:$0xff]  }
 0x202   : > { %v2757_v57 = vld [vmem:[%s3510_s11 + $0x40] ss:$28 sps:$4 sm:$0xff]  }
 0x203   : > { %2610 = vmatmul.mubr.msk.bf16.vlgmr.msra.gmra.mrb[8].mxu1 %vm1270_vm1, %v1230_v58  ;;  %v2765_v58 = vld [vmem:[%s3510_s11 + $0x7c] ss:$28 sps:$4 sm:$0xff]  }
 0x204   : > { %2615 = vmatprep.mubr.msk.bf16.mxu1 %vm2897_vm0, %v2896_v38  ;;  %2614 = vmatpush3.bf16.msra.mxu1 %v2743_v9  ;;  %v2792_v9 = vld [vmem:[%s3510_s11 + $0x18c] ss:$28 sps:$4 sm:$0xff]  }
 0x205   : > { %2619 = vmatprep.subr.bf16.mxu1 %v2896_v38 }
 0x2d6   : > { %v1308_v0 = vpop.f32.mrb[8].mxu1 }
 0x2d7   : > { %v1309_v1 = vadd.f32 %v2347_v60, %v1308_v0  ;;  %v2611_v2 = vpop.f32.mrb[9].mxu1  ;;  %v2769_v0 = vld [vmem:[%s3510_s11 + $0xb0] ss:$28 sps:$4 sm:$0xff]  }
 0x2d8   : > { %v1311_v3 = vpop.f32.mrb[10].mxu1  ;;  %v2775_v2 = vld [vmem:[%s3510_s11 + $0xe8] ss:$28 sps:$4 sm:$0xff]  }
 0x2d9   : > { %v2353_v4 = vclamps-f32 %v1309_v1, 1e-07  ;;  %v1312_v5 = vadd.f32 %v2347_v60, %v1311_v3  ;;  %v2612_v6 = vpop.f32.mrb[11].mxu1  ;;  %v2763_v60 = vld [vmem:[%s3510_s11 + $0x78] ss:$28 sps:$4 sm:$0xff]  }
 0x2da   : > { %v2783_v3 = vld [vmem:[%s3510_s11 + $0x124] ss:$28 sps:$4 sm:$0xff]   ;;  %v2789_v6 = vld [vmem:[%s3510_s11 + $0x15c] ss:$28 sps:$4 sm:$0xff]  }
 0x2db   : > { %v2354_v7 = vclamps-f32 %v1312_v5, 1e-07  ;;  %v1322_v8 = vsel %vm1317_vm2, %v1309_v1, %v2353_v4  ;;  %v2777_v1 = vld [vmem:[%s3510_s11 + $0xec] ss:$28 sps:$4 sm:$0xff]   ;;  %v2781_v4 = vld [vmem:[%s3510_s11 + $0x120] ss:$28 sps:$4 sm:$0xff]  }
 0x2dc   : > { %1336 = vrot.lane.b32.xlu0 %v1322_v8, %s2898_s18  ;;  %v1326_v12 = vmul.f32 0.5, %v1322_v8  ;;  %v2454_v27 = vpack.c.bf16 %v1322_v8, %v1322_v8  ;;  %v2787_v8 = vld [vmem:[%s3510_s11 + $0x158] ss:$28 sps:$4 sm:$0xff]  }
 0x2dd   : > { %v1323_v10 = vsel %vm1317_vm2, %v1312_v5, %v2354_v7  ;;  %v2786_v5 = vld [vmem:[%s3510_s11 + $0x154] ss:$28 sps:$4 sm:$0xff]  }
 0x2de   : > { %v2455_v11 = vpack.c.bf16 %v1323_v10, %v1323_v10  ;;  %v1327_v13 = vmul.f32 0.5, %v1323_v10  ;;  %v1328_v14 = vmul.f32 1.442695, %v1326_v12  ;;  %v2784_v7 = vld [vmem:[%s3510_s11 + $0x150] ss:$28 sps:$4 sm:$0xff]   ;;  %1898 = vmatprep.subr.bf16.mxu0 %v2786_v5 }
 0x2df   : > { %1899 = vmatpush1.bf16.msra.mxu0 %v2784_v7  ;;  %v2793_v12 = vld [vmem:[%s3510_s11 + $0x190] ss:$28 sps:$4 sm:$0xff]  }
 0x2e0   : > { %1338 = vrot.lane.b32.xlu0 %v1323_v10, %s2898_s18  ;;  %v1330_v15 = vmul.f32 1.442695, %v1327_v13  ;;  %2828 = vpow2.f32 %v1328_v14  ;;  %v2795_v10 = vld [vmem:[%s3510_s11 + $0x194] ss:$28 sps:$4 sm:$0xff]   ;;  %1900 = vmatprep.subr.bf16.mxu0 %v2792_v9  ;;  %v2900_v14 = vmov 0  }
 0x2e1   : > { %v2798_v13 = vld [vmem:[%s3510_s11 + $0x14] ss:$28 sps:$4 sm:$0xff]   ;;  %1918 = vmatprep.mubr.bf16.mxu0 %v2900_v14 }
 0x2e2   : > { %2830 = vpow2.f32 %v1330_v15  ;;  %v2358_v15 = vld [vmem:[%s3509_s10] ss:$0 sm:$0xff] }
 0x2e4   : > { %2200 = vrot.lane.b32.xlu0 %v2455_v11, %s2898_s18  ;;  %v2790_v11 = vld [vmem:[%s3510_s11 + $0x188] ss:$28 sps:$4 sm:$0xff]  }
 0x2e5   : > { %1901 = vmatpush1.bf16.msra.mxu0 %v2790_v11 }
 0x2e6   : > { %1972 = vmatprep.subr.bf16.mxu0 %v2798_v13 }
 0x2ea   : > { %v2829_v16 = vpop.eup %2828 }
 0x2eb   : > { %v1332_v21 = vmul.f32 %v2829_v16, %v1324_v17 }
 0x2ec   : > { %v2831_v19 = vpop.eup %2830 }
 0x2ed   : > { %v1333_v22 = vmul.f32 %v2831_v19, %v1325_v18 }
 0x34e   : > { %v1337_v20 = vpop.permute.xlu0 %1336 }
 0x34f   : > { %v1342_v24 = vadd.f32 %v1337_v20, %v1332_v21 }
 0x352   : > { %v1339_v23 = vpop.permute.xlu0 %1338 }
 0x353   : > { %v1343_v25 = vadd.f32 %v1339_v23, %v1333_v22 }
 0x355   : > { %v1344_v26 = vpack.c.bf16 %v1343_v25, %v1342_v24  ;;  %v2796_v24 = vld [vmem:[%s3510_s11 + $0x10] ss:$28 sps:$4 sm:$0xff]   ;;  %v2799_v25 = vld [vmem:[%s3510_s11 + $0x18] ss:$28 sps:$4 sm:$0xff]  }
 0x357   : > { %1355 = vrot.lane.b32.xlu1 %v1344_v26, %s2899_s19 }
 0x35b   : > { %2198 = vrot.lane.b32.xlu1 %v2454_v27, %s2898_s18  ;;  %v2802_v27 = vld [vmem:[%s3510_s11 + $0x4c] ss:$28 sps:$4 sm:$0xff]  }
 0x3c9   : > { %v1356_v62 = vpop.permute.xlu1 %1355 }
 0x3ca   : > { %2616 = vmatmul.mubr.msk.bf16.vlgmr.msra.gmra.mrb[12].mxu1 %vm1363_vm3, %v1356_v62  ;;  %v2803_v62 = vld [vmem:[%s3510_s11 + $0x50] ss:$28 sps:$4 sm:$0xff]  }
 0x3cb   : > { %2620 = vmatpush3.bf16.msra.mxu1 %v2744_v28  ;;  %2627 = vmatprep.mubr.msk.bf16.mxu1 %vm2897_vm0, %v2896_v38  ;;  %v2800_v28 = vld [vmem:[%s3510_s11 + $0x48] ss:$28 sps:$4 sm:$0xff]  }
 0x3cc   : > { %2621 = vmatprep.subr.bf16.mxu1 %v2896_v38 }
 0x3cf   : > { %2622 = vmatpush3.bf16.msra.mxu1 %v2745_v63  ;;  %v2806_v63 = vld [vmem:[%s3510_s11 + $0x84] ss:$28 sps:$4 sm:$0xff]  }
 0x3d0   : > { %2623 = vmatprep.subr.bf16.mxu1 %v2896_v38 }
 0x3d3   : > { %2624 = vmatpush3.bf16.msra.mxu1 %v2746_v29  ;;  %v2804_v29 = vld [vmem:[%s3510_s11 + $0x80] ss:$28 sps:$4 sm:$0xff]  }
 0x3d4   : > { %2625 = vmatprep.subr.bf16.mxu1 %v2896_v38 }
 0x3d7   : > { %2626 = vmatpush3.bf16.msra.mxu1 %v2747_v30  ;;  %v2807_v30 = vld [vmem:[%s3510_s11 + $0x88] ss:$28 sps:$4 sm:$0xff]  }
 0x3d8   : > { %1929 = vmatprep.subr.bf16.mxu1 %v2753_v33  ;;  %v2811_v33 = vld [vmem:[%s3510_s11 + $0xc0] ss:$28 sps:$4 sm:$0xff]  }
 0x49d   : > { %v1401_v46 = vpop.f32.mrb[12].mxu1 }
 0x49e   : > { %v1402_v47 = vadd.f32 %v2355_v45, %v1401_v46  ;;  %v2617_v48 = vpop.f32.mrb[13].mxu1  ;;  %v2827_v46 = vld [vmem:[%s3510_s11 + $0x1a0] ss:$28 sps:$4 sm:$0xff]  }
 0x49f   : > { %v1404_v49 = vpop.f32.mrb[14].mxu1 }
 0x4a0   : > { %v1405_v50 = vadd.f32 %v2355_v45, %v1404_v49  ;;  %v2618_v51 = vpop.f32.mrb[15].mxu1  ;;  %v1408_v52 = vmax.f32 %v1402_v47, 0.0  ;;  %v2824_v45 = vld [vmem:[%s3510_s11 + $0x198] ss:$28 sps:$4 sm:$0xff]   ;;  %v3458_v47 = vshrl.u32 %v1315_v59, 7 }
 0x4a2   : > { %v1409_v53 = vmax.f32 %v1405_v50, 0.0  ;;  %v1565_v48 = vsub.s32 0, %v3458_v47  ;;  %v1573_v49 = vsub.s32 2, %v3458_v47  ;;  %v3465_v50 = vld [vmem:[%s3511_s12] sm:$0xff]  ;;  %v1569_v51 = vsub.s32 1, %v3458_v47 }
 0x4a4   : > { %v1410_v55 = vpack.c.bf16 %v1409_v53, %v1408_v52  ;;  %v1566_v52 = vrot.slane %v3465_v50, %v1565_v48  ;;  %v1574_v53 = vrot.slane %v3465_v50, %v1573_v49  ;;  %v1570_v59 = vrot.slane %v3465_v50, %v1569_v51 }
 0x4a6   : > { %2628 = vmatmul.mubr.msk.bf16.vlgmr.msra.gmra.mrb[16].mxu1 %vm1270_vm1, %v1410_v55 }
 0x4a7   : > { %1930 = vmatpush1.bf16.msra.mxu1 %v2751_v54  ;;  %1961 = vmatprep.mubr.bf16.mxu1 %v2900_v14 }
 0x4a8   : > { %1931 = vmatprep.subr.bf16.mxu1 %v2759_v56 }
 0x4ab   : > { %1932 = vmatpush1.bf16.msra.mxu1 %v2757_v57 }
 0x4ac   : > { %1933 = vmatprep.subr.bf16.mxu1 %v2765_v58 }
 0x4af   : > { %1934 = vmatpush1.bf16.msra.mxu1 %v2763_v60 }
 0x4b0   : > { %1935 = vmatprep.subr.bf16.mxu1 %v2771_v61 }
 0x4b3   : > { %1936 = vmatpush1.bf16.msra.mxu1 %v2769_v0 }
 0x4b4   : > { %1937 = vmatprep.subr.bf16.mxu1 %v2777_v1 }
 0x4b7   : > { %1938 = vmatpush1.bf16.msra.mxu1 %v2775_v2 }
 0x4b8   : > { %1939 = vmatprep.subr.bf16.mxu1 %v2783_v3 }
 0x4bb   : > { %1940 = vmatpush1.bf16.msra.mxu1 %v2781_v4 }
 0x4bc   : > { %1941 = vmatprep.subr.bf16.mxu1 %v2789_v6 }
 0x4bf   : > { %1942 = vmatpush1.bf16.msra.mxu1 %v2787_v8 }
 0x4c0   : > { %1943 = vmatprep.subr.bf16.mxu1 %v2795_v10 }
 0x4c3   : > { %1944 = vmatpush1.bf16.msra.mxu1 %v2793_v12 }
 0x4c4   : > { %2631 = vmatprep.subr.bf16.mxu1 %v2896_v38 }
 0x579   : > { %v1487_v16 = vpop.f32.mrb[16].mxu1 }
 0x57a   : > { %v1488_v17 = vadd.f32 %v2358_v15, %v1487_v16  ;;  %v2629_v18 = vpop.f32.mrb[17].mxu1 }
 0x57b   : > { %v1490_v19 = vpop.f32.mrb[18].mxu1 }
 0x57c   : > { %v1491_v20 = vadd.f32 %v2358_v15, %v1490_v19  ;;  %v2630_v21 = vpop.f32.mrb[19].mxu1  ;;  %v1494_v22 = vmax.f32 %v1488_v17, 0.0 }
 0x57e   : > { %v1495_v23 = vmax.f32 %v1491_v20, 0.0 }
 0x580   : > { %v1496_v26 = vpack.c.bf16 %v1495_v23, %v1494_v22 }
 0x582   : > { %1919 = vmatmul.mubr.bf16.vlgmr.msra.gmra.mrb[12].mxu0 %v1496_v26  ;;  %1962 = vmatmul.mubr.bf16.vlgmr.msra.gmra.mrb[20].mxu1 %v1496_v26 }
 0x583   : > { %1973 = vmatpush1.bf16.msra.mxu0 %v2796_v24  ;;  %2632 = vmatpush3.bf16.msra.mxu1 %v2799_v25 }
 0x584   : > { %1974 = vmatprep.subr.bf16.mxu0 %v2802_v27  ;;  %2633 = vmatprep.subr.bf16.mxu1 %v2896_v38 }
 0x585   : > { %2004 = vmatprep.mubr.bf16.mxu0 %v2900_v14  ;;  %2647 = vmatprep.mubr.msk.bf16.mxu1 %vm2897_vm0, %v2896_v38 }
 0x587   : > { %1975 = vmatpush1.bf16.msra.mxu0 %v2800_v28  ;;  %2634 = vmatpush3.bf16.msra.mxu1 %v2803_v62 }
 0x588   : > { %1976 = vmatprep.subr.bf16.mxu0 %v2806_v63  ;;  %2635 = vmatprep.subr.bf16.mxu1 %v2896_v38 }
 0x58b   : > { %1977 = vmatpush1.bf16.msra.mxu0 %v2804_v29  ;;  %2636 = vmatpush3.bf16.msra.mxu1 %v2807_v30 }
 0x58c   : > { %1978 = vmatprep.subr.bf16.mxu0 %v2810_v31  ;;  %2637 = vmatprep.subr.bf16.mxu1 %v2896_v38 }
 0x58f   : > { %1979 = vmatpush1.bf16.msra.mxu0 %v2808_v32  ;;  %2638 = vmatpush3.bf16.msra.mxu1 %v2811_v33  ;;  %v1581_v32 = vsub.s32 4, %v3458_v47  ;;  %v1589_v33 = vsub.s32 6, %v3458_v47 }
 0x590   : > { %1980 = vmatprep.subr.bf16.mxu0 %v2814_v34  ;;  %2639 = vmatprep.subr.bf16.mxu1 %v2896_v38  ;;  %v1585_v34 = vsub.s32 5, %v3458_v47 }
 0x593   : > { %1981 = vmatpush1.bf16.msra.mxu0 %v2812_v35  ;;  %2640 = vmatpush3.bf16.msra.mxu1 %v2815_v36 }
 0x594   : > { %1982 = vmatprep.subr.bf16.mxu0 %v2818_v37  ;;  %2641 = vmatprep.subr.bf16.mxu1 %v2896_v38  ;;  %v1582_v37 = vrot.slane %v3465_v50, %v1581_v32 }
 0x597   : > { %1983 = vmatpush1.bf16.msra.mxu0 %v2816_v39  ;;  %2642 = vmatpush3.bf16.msra.mxu1 %v2819_v40  ;;  %v1590_v39 = vrot.slane %v3465_v50, %v1589_v33 }
 0x598   : > { %1984 = vmatprep.subr.bf16.mxu0 %v2822_v41  ;;  %2643 = vmatprep.subr.bf16.mxu1 %v2896_v38  ;;  %v1586_v41 = vrot.slane %v3465_v50, %v1585_v34 }
 0x59b   : > { %1985 = vmatpush1.bf16.msra.mxu0 %v2820_v42  ;;  %2644 = vmatpush3.bf16.msra.mxu1 %v2823_v43 }
 0x59c   : > { %1986 = vmatprep.subr.bf16.mxu0 %v2826_v44  ;;  %2645 = vmatprep.subr.bf16.mxu1 %v2896_v38  ;;  %v1577_v38 = vsub.s32 3, %v3458_v47 }
 0x59e   : > { %v1578_v54 = vrot.slane %v3465_v50, %v1577_v38 }
 0x59f   : > { %1987 = vmatpush1.bf16.msra.mxu0 %v2824_v45  ;;  %2646 = vmatpush3.bf16.msra.mxu1 %v2827_v46 }
 0x5a2   : > { %2005 = vmatmul.mubr.bf16.vlgmr.msra.gmra.mrb[16].mxu0 %v1496_v26  ;;  %2648 = vmatmul.mubr.bf16.vlgmr.msra.gmra.mrb[24].mxu1 %v1496_v26 }
 0x655   : > { %v1920_v55 = vpop.f32.mrb[12].mxu0  ;;  %v1963_v56 = vpop.f32.mrb[20].mxu1 }
 0x656   : > { %v1921_v57 = vadd.f32 %v1920_v55, %v1566_v52  ;;  %v1964_v58 = vadd.f32 %v1963_v56, %v1574_v53  ;;  %v1922_v60 = vpop.f32.mrb[13].mxu0  ;;  %v1965_v61 = vpop.f32.mrb[21].mxu1 }
 0x657   : > { %v1923_v0 = vadd.f32 %v1922_v60, %v1570_v59  ;;  %v1966_v1 = vadd.f32 %v1965_v61, %v1578_v54  ;;  %v1924_v2 = vpop.f32.mrb[14].mxu0  ;;  %v1967_v3 = vpop.f32.mrb[22].mxu1 }
 0x658   : > { %v2420_v4 = vmul.f32 -1.442695, %v1921_v57  ;;  %v2422_v5 = vmul.f32 -1.442695, %v1964_v58  ;;  %v1925_v6 = vadd.f32 %v1924_v2, %v1566_v52  ;;  %v1968_v7 = vadd.f32 %v1967_v3, %v1574_v53  ;;  %v1926_v8 = vpop.f32.mrb[15].mxu0  ;;  %v1969_v9 = vpop.f32.mrb[23].mxu1 }
 0x659   : > { %v2421_v10 = vmul.f32 -1.442695, %v1923_v0  ;;  %v2423_v11 = vmul.f32 -1.442695, %v1966_v1  ;;  %v1927_v12 = vadd.f32 %v1926_v8, %v1570_v59  ;;  %v1970_v13 = vadd.f32 %v1969_v9, %v1578_v54 }
 0x65a   : > { %2832 = vpow2.f32 %v2420_v4  ;;  %v2427_v14 = vmul.f32 -1.442695, %v1925_v6  ;;  %v2429_v15 = vmul.f32 -1.442695, %v1968_v7 }
 0x65b   : > { %2834 = vpow2.f32 %v2422_v5  ;;  %v2428_v16 = vmul.f32 -1.442695, %v1927_v12  ;;  %v2430_v17 = vmul.f32 -1.442695, %v1970_v13 }
 0x65c   : > { %2836 = vpow2.f32 %v2421_v10 }
 0x65d   : > { %2838 = vpow2.f32 %v2423_v11 }
 0x65e   : > { %2840 = vpow2.f32 %v2427_v14 }
 0x65f   : > { %2842 = vpow2.f32 %v2429_v15 }
 0x660   : > { %2844 = vpow2.f32 %v2428_v16 }
 0x661   : > { %2846 = vpow2.f32 %v2430_v17 }
 0x664   : > { %v2833_v18 = vpop.eup %2832 }
 0x665   : > { %v2835_v19 = vpop.eup %2834  ;;  %v2098_v20 = vadd.f32 1.0, %v2833_v18 }
 0x666   : > { %v2837_v21 = vpop.eup %2836  ;;  %v2100_v22 = vadd.f32 1.0, %v2835_v19 }
 0x667   : > { %v2839_v23 = vpop.eup %2838  ;;  %2848 = vrcp.f32 %v2098_v20  ;;  %v2099_v24 = vadd.f32 1.0, %v2837_v21 }
 0x668   : > { %v2841_v25 = vpop.eup %2840  ;;  %2850 = vrcp.f32 %v2100_v22  ;;  %v2101_v26 = vadd.f32 1.0, %v2839_v23 }
 0x669   : > { %v2843_v27 = vpop.eup %2842  ;;  %2852 = vrcp.f32 %v2099_v24  ;;  %v2105_v28 = vadd.f32 1.0, %v2841_v25 }
 0x66a   : > { %v2845_v62 = vpop.eup %2844  ;;  %2854 = vrcp.f32 %v2101_v26  ;;  %v2107_v63 = vadd.f32 1.0, %v2843_v27 }
 0x66b   : > { %v2847_v29 = vpop.eup %2846  ;;  %2856 = vrcp.f32 %v2105_v28  ;;  %v2106_v30 = vadd.f32 1.0, %v2845_v62 }
 0x66c   : > { %2858 = vrcp.f32 %v2107_v63  ;;  %v2108_v31 = vadd.f32 1.0, %v2847_v29  ;;  %v2199_v63 = vpop.permute.xlu1 %2198  ;;  %v2201_v29 = vpop.permute.xlu0 %2200 }
 0x66d   : > { %2860 = vrcp.f32 %v2106_v30 }
 0x66e   : > { %2862 = vrcp.f32 %v2108_v31 }
 0x671   : > { %v2849_v35 = vpop.eup %2848 }
 0x672   : > { %v2851_v36 = vpop.eup %2850 }
 0x673   : > { %v2853_v40 = vpop.eup %2852 }
 0x674   : > { %v2855_v42 = vpop.eup %2854  ;;  %v2446_v43 = vpack.c.bf16 %v2853_v40, %v2849_v35 }
 0x675   : > { %v2857_v44 = vpop.eup %2856  ;;  %v2447_v45 = vpack.c.bf16 %v2855_v42, %v2851_v36  ;;  %v2006_v46 = vpop.f32.mrb[16].mxu0 }
 0x676   : > { %v2049_v47 = vpop.f32.mrb[24].mxu1  ;;  %v2859_v48 = vpop.eup %2858  ;;  %2184 = vst [vmem:[%s3483_s22] sm:$0xff] %v2446_v43  ;;  %v2007_v49 = vadd.f32 %v2006_v46, %v1582_v37 }
 0x677   : > { %v2050_v51 = vadd.f32 %v2049_v47, %v1590_v39  ;;  %v2008_v38 = vpop.f32.mrb[17].mxu0  ;;  %v2649_v52 = vpop.f32.mrb[25].mxu1  ;;  %2185 = vst [vmem:[%s3483_s22 + $0x8] sm:$0xff] %v2447_v45 }
 0x678   : > { %v2861_v53 = vpop.eup %2860  ;;  %v2009_v59 = vadd.f32 %v2008_v38, %v1586_v41  ;;  %v2010_v54 = vpop.f32.mrb[18].mxu0  ;;  %v2424_v57 = vmul.f32 -1.442695, %v2007_v49 }
 0x679   : > { %v2052_v55 = vpop.f32.mrb[26].mxu1  ;;  %v2863_v50 = vpop.eup %2862  ;;  %v2450_v56 = vpack.c.bf16 %v2861_v53, %v2857_v44  ;;  %v2426_v58 = vmul.f32 -1.442695, %v2050_v51  ;;  %v2011_v60 = vadd.f32 %v2010_v54, %v1582_v37 }
 0x67a   : > { %v2012_v61 = vpop.f32.mrb[19].mxu0  ;;  %v2650_v0 = vpop.f32.mrb[27].mxu1  ;;  %v2451_v1 = vpack.c.bf16 %v2863_v50, %v2859_v48  ;;  %v2425_v2 = vmul.f32 -1.442695, %v2009_v59  ;;  %v2053_v3 = vadd.f32 %v2052_v55, %v1590_v39  ;;  %2864 = vpow2.f32 %v2424_v57 }
 0x67b   : > { %v2013_v4 = vadd.f32 %v2012_v61, %v1586_v41  ;;  %2188 = vst [vmem:[%s3483_s22 + $0x1c] sm:$0xff] %v2450_v56  ;;  %v2431_v5 = vmul.f32 -1.442695, %v2011_v60  ;;  %2866 = vpow2.f32 %v2426_v58 }
 0x67c   : > { %2189 = vst [vmem:[%s3483_s22 + $0x24] sm:$0xff] %v2451_v1  ;;  %v2433_v6 = vmul.f32 -1.442695, %v2053_v3  ;;  %2868 = vpow2.f32 %v2425_v2 }
 0x67d   : > { %v2432_v7 = vmul.f32 -1.442695, %v2013_v4  ;;  %2870 = vpow2.f32 %v2431_v5 }
 0x67e   : > { %2872 = vpow2.f32 %v2433_v6 }
 0x67f   : > { %2874 = vpow2.f32 %v2432_v7 }
 0x684   : > { %v2865_v8 = vpop.eup %2864 }
 0x685   : > { %v2867_v9 = vpop.eup %2866  ;;  %v2102_v10 = vadd.f32 1.0, %v2865_v8 }
 0x686   : > { %v2869_v11 = vpop.eup %2868  ;;  %v2104_v12 = vadd.f32 1.0, %v2867_v9 }
 0x687   : > { %v2871_v13 = vpop.eup %2870  ;;  %2876 = vrcp.f32 %v2102_v10  ;;  %v2103_v14 = vadd.f32 1.0, %v2869_v11 }
 0x688   : > { %v2873_v15 = vpop.eup %2872  ;;  %2878 = vrcp.f32 %v2104_v12  ;;  %v2109_v16 = vadd.f32 1.0, %v2871_v13 }
 0x689   : > { %v2875_v17 = vpop.eup %2874  ;;  %2880 = vrcp.f32 %v2103_v14  ;;  %v2111_v18 = vadd.f32 1.0, %v2873_v15 }
 0x68a   : > { %2882 = vrcp.f32 %v2109_v16  ;;  %v2110_v19 = vadd.f32 1.0, %v2875_v17 }
 0x68b   : > { %2884 = vrcp.f32 %v2111_v18 }
 0x68c   : > { %2886 = vrcp.f32 %v2110_v19 }
 0x691   : > { %v2877_v20 = vpop.eup %2876 }
 0x692   : > { %v2879_v21 = vpop.eup %2878 }
 0x693   : > { %v2881_v22 = vpop.eup %2880  ;;  %v2449_v23 = vpack.c.bf16 %v2879_v21, %v2879_v21 }
 0x694   : > { %v2883_v24 = vpop.eup %2882  ;;  %v2448_v25 = vpack.c.bf16 %v2881_v22, %v2877_v20 }
 0x695   : > { %v2885_v26 = vpop.eup %2884  ;;  %2187 = vst [vmem:[%s3483_s22 + $0x18] sm:$0xf] %v2449_v23 }
 0x696   : > { %v2887_v27 = vpop.eup %2886  ;;  %2186 = vst [vmem:[%s3483_s22 + $0x10] sm:$0xff] %v2448_v25  ;;  %v2453_v28 = vpack.c.bf16 %v2885_v26, %v2885_v26  ;;  %2205 = vst.msk [vmem:[%s3483_s22 + $0x18] sm:$0xf] %vm2204_vm4, %v2199_v63 }
 0x697   : > { %v2452_v62 = vpack.c.bf16 %v2887_v27, %v2883_v24 }
 0x698   : > { %2191 = vst [vmem:[%s3483_s22 + $0x34] sm:$0xf] %v2453_v28 }
 0x699   : > { %2190 = vst [vmem:[%s3483_s22 + $0x2c] sm:$0xff] %v2452_v62  ;;  %2206 = vst.msk [vmem:[%s3483_s22 + $0x34] sm:$0xf] %vm2204_vm4, %v2201_v29 }
 0x69a PF: > { %s23_s25 = sadd.s32 1, %s2894_s25  }
 0x69b   : > { %p20_p4 = scmp.ge.s32.totalorder %s23_s25, 4  }
 0x69d   :  { %22 = sbr.rel (!%p20_p4) target bundleno = 1 (0x1), region = 102 }

</bundles_post_ra>
